<compile_context>
chip_gen: v7x
topology: tpu7x:2x2x1
jax: 0.10.0
libtpu: 0.0.40
codegen_flags: <defaults>
</compile_context>

<pallas_src>
import functools
import math

import numpy as np
import jax
import jax.numpy as jnp
from jax import lax
from jax.experimental import pallas as pl
from jax.experimental.pallas import tpu as pltpu

PAD_IDX, UNK_IDX, EOS_IDX = 0, 1, 2
LN_EPS = 1e-5


# ----------------------------- in-kernel helpers ------------------------------

def _shift_rows(x, off, keep_cols, roll_shift_sign):
    """shifted[t, :] = x[t + off, :], zeros outside [0, T)   ('same' conv tap).

    XLU sublane rotate (pltpu.roll, static shift) + a hoisted (T, 1) boundary
    keep-column broadcast across lanes (no per-call (T, M) iota/compare).
    roll_shift_sign is probed on the host so an np.roll-vs-reverse convention
    difference in pltpu.roll cannot silently swap the +1/-1 taps.
    """
    if off == 0:
        return x
    T = x.shape[0]
    r = pltpu.roll(x, shift=(roll_shift_sign * off) % T, axis=0)
    return jnp.where(keep_cols[off], r, 0.0)


def _layer_norm(h, g, b, eps=LN_EPS):
    # single-pass LN: E[x] and E[x^2] reduced independently (co-issuable),
    # var = E[x^2] - E[x]^2.
    mu = jnp.mean(h, axis=-1, keepdims=True)
    mu2 = jnp.mean(h * h, axis=-1, keepdims=True)
    var = jnp.maximum(mu2 - mu * mu, 0.0)
    return (h - mu) * lax.rsqrt(var + eps) * g + b


def _conv_relu_ln(x, valid_col, keep_cols, roll_shift_sign,
                  w_ref, b_ref, g_ref, be_ref, K, pad):
    """VariancePredictor block: mask -> Conv1d('same') -> ReLU -> LayerNorm.

    The K taps are fused into ONE MXU matmul: shifted copies stacked along
    lanes -> (T, K*Cin), weight pre-reshaped on host to (K*Cin, Cout).  Keep
    the stacked form: a single 384-deep contraction wastes less of the
    256-deep v6e/v7x MXU than three 128-deep per-tap matmuls.
    """
    xm = jnp.where(valid_col, x, 0.0)                    # zero padded rows
    taps = [_shift_rows(xm, k - pad, keep_cols, roll_shift_sign) for k in range(K)]
    stacked = jnp.concatenate(taps, axis=1).astype(jnp.bfloat16)   # (T, K*Cin)
    h = jnp.dot(stacked, w_ref[...], preferred_element_type=jnp.float32) + b_ref[...]
    h = jnp.maximum(h, 0.0)
    return _layer_norm(h, g_ref[...], be_ref[...])
    # TODO(synk): dropout after LayerNorm omitted (eval-mode identity).


# ----------------------------- Pallas kernels ---------------------------------

def _char_upsample_duration_kernel(K, duration_factor, min_duration, roll_shift_sign,
                                   enc_ref, idx_ref, vrow_ref, chid_ref,
                                   embw_ref, freqs_ref,
                                   w1_ref, b1_ref, g1_ref, be1_ref,
                                   w2_ref, b2_ref, g2_ref, be2_ref,
                                   pw_ref, pb_ref,
                                   sc_ref, dur_ref):
    # Fused: character_level_upsampling + VarianceAdaptor duration predictor.
    #   enc_ref:   (1, S, M)  bf16 encoder_output row for this batch element
    #   idx_ref:   (1, T, 1)  int32 HardUpsampling gather index, -1 where padded
    #   vrow_ref:  (1, 1, T)  f32 validity, lane-major (duration mask)
    #   chid_ref:  (1, T, 1)  int32 char token ids
    #   embw_ref:  (V, M)     bf16 char embedding * scale, PAD row zeroed
    #   freqs_ref: (T, M)     f32 pos_emb_alpha_char * sinusoidal table
    #   w*_ref:    (K*Cin, Cout) bf16 stacked-tap conv weights; b/g/be: (1, H) f32
    #   pw_ref:    (1, H) f32 duration projection weight; pb_ref: (1,) f32 in SMEM
    enc = enc_ref[0]                                    # (S, M) bf16
    idx = idx_ref[0]                                    # (T, 1) int32
    T = idx.shape[0]
    S = enc.shape[0]
    V = embw_ref.shape[0]

    # --- HardUpsampling(encoder_output, char_lens): bf16 one-hot gather matmul.
    #     Validity is folded into idx (-1 never matches), so no f32 temp / mask.
    s_iota = lax.broadcasted_iota(jnp.int32, (T, S), 1)
    U = (idx == s_iota).astype(jnp.bfloat16)
    up = jnp.dot(U, enc, preferred_element_type=jnp.float32)          # (T, M) f32

    # --- char embedding lookup as one-hot matmul (scale pre-folded, PAD row 0)
    v_iota = lax.broadcasted_iota(jnp.int32, (T, V), 1)
    C = (chid_ref[0] == v_iota).astype(jnp.bfloat16)
    char_emb = jnp.dot(C, embw_ref[...], preferred_element_type=jnp.float32)

    # seqs += pos_emb_alpha_char*(pos_enc(seqs)-seqs) + scale*embed_char(char_seqs)
    seqs_char = up + freqs_ref[...] + char_emb
    sc_ref[0] = seqs_char.astype(sc_ref.dtype)

    # --- VariancePredictor (duration): [mask->conv->ReLU->LN] x2 -> mask -> proj
    valid_col = idx >= 0                                # (T, 1) bool (no vcol DMA)
    pad = (K - 1) // 2
    t_col = lax.broadcasted_iota(jnp.int32, (T, 1), 0)  # hoisted, shared keep cols
    keep_cols = {off: jnp.logical_and(t_col + off >= 0, t_col + off < T)
                 for off in range(-pad, pad + 1) if off != 0}

    h1 = _conv_relu_ln(seqs_char, valid_col, keep_cols, roll_shift_sign,
                       w1_ref, b1_ref, g1_ref, be1_ref, K, pad)
    h2 = _conv_relu_ln(h1, valid_col, keep_cols, roll_shift_sign,
                       w2_ref, b2_ref, g2_ref, be2_ref, K, pad)
    h2 = jnp.where(valid_col, h2, 0.0)

    # projection to scalar log-duration, emitted lane-dense as a (1, T) row:
    #   logd[0, t] = sum_h pw[0, h] * h2[t, h]
    # The (1,H)x(T,H) contraction folds the column->row transpose into the
    # matmul (review: the sum + skinny-transpose alternative would reintroduce
    # an explicit cross-lane transpose).
    logd = lax.dot_general(pw_ref[...], h2, (((1,), (1,)), ((), ())),
                           preferred_element_type=jnp.float32)        # (1, T)
    logd = logd + pb_ref[0]
    dur = jnp.round((jnp.exp(logd) - 1.0) * duration_factor)
    dur = jnp.maximum(dur, float(min_duration))
    dur = jnp.where(vrow_ref[0] > 0.0, dur, 0.0)
    dur_ref[0] = dur.astype(jnp.int32)
    # TODO(synk): film_cond_emb conditioning of the variance adaptor not modeled
    # (forward is exercised with film_cond_emb=None).


def _unit_upsample_kernel(lo_ref, hi_ref, idx_ref, sclo_ref, schi_ref, freqs_ref,
                          out_ref):
    # HardUpsampling by predicted durations + forward_unit_pos_embedding for one
    # (batch, 128-row) output tile.  The two scalar-prefetched window block
    # indices (lo_ref/hi_ref) were already consumed by the index_maps; the two
    # fetched 128-row source blocks always cover this tile's source span
    # (idx monotone, min_duration >= 1).
    del lo_ref, hi_ref
    idx = idx_ref[0]                                    # (Tt, 1) int32, window-rel
    src = jnp.concatenate([sclo_ref[0], schi_ref[0]], axis=0)   # (2W, M) bf16
    Tt = idx.shape[0]
    W2 = src.shape[0]
    s_iota = lax.broadcasted_iota(jnp.int32, (Tt, W2), 1)
    U = (idx == s_iota).astype(jnp.bfloat16)            # -1 rows -> all zero
    up = jnp.dot(U, src, preferred_element_type=jnp.float32)     # (Tt, M) f32
    out_ref[0] = (up + freqs_ref[...].astype(jnp.float32)).astype(out_ref.dtype)
    # TODO(synk): final dropout omitted (eval-mode identity).


def _roll_probe_kernel(x_ref, o_ref):
    o_ref[...] = pltpu.roll(x_ref[...], shift=1, axis=0)


# ----------------------------- pallas_call wrappers ---------------------------

def _full_spec(shape):
    zeros = (0,) * len(shape)
    return pl.BlockSpec(shape, lambda b, _z=zeros: _z)


def detect_roll_shift_sign():
    """Return s such that pltpu.roll(x, (s*off) % T, axis=0)[t] == x[t + off]."""
    x = np.arange(8 * 128, dtype=np.float32).reshape(8, 128)
    y = np.asarray(pl.pallas_call(
        _roll_probe_kernel,
        out_shape=jax.ShapeDtypeStruct((8, 128), jnp.float32))(jnp.asarray(x)))
    if np.array_equal(y, np.roll(x, 1, axis=0)):   # np semantics: y[t] = x[t-1]
        return -1
    if np.array_equal(y, np.roll(x, -1, axis=0)):  # reversed:     y[t] = x[t+1]
        return 1
    raise AssertionError("unexpected pltpu.roll semantics")


def char_upsample_and_duration(enc_bf16, idx1, vrow1, char_ids,
                               embw_scaled, freqs_char,
                               w1s, b1, g1, be1, w2s, b2, g2, be2, pw, pb,
                               *, K, duration_factor, min_duration, roll_shift_sign):
    N, S, M = enc_bf16.shape
    T = idx1.shape[1]
    V = embw_scaled.shape[0]
    H = b1.shape[1]
    kernel = functools.partial(_char_upsample_duration_kernel, K,
                               duration_factor, min_duration, roll_shift_sign)
    return pl.pallas_call(
        kernel,
        out_shape=(jax.ShapeDtypeStruct((N, T, M), jnp.bfloat16),
                   jax.ShapeDtypeStruct((N, 1, T), jnp.int32)),
        grid=(N,),
        in_specs=[
            pl.BlockSpec((1, S, M), lambda b: (b, 0, 0)),
            pl.BlockSpec((1, T, 1), lambda b: (b, 0, 0)),
            pl.BlockSpec((1, 1, T), lambda b: (b, 0, 0)),
            pl.BlockSpec((1, T, 1), lambda b: (b, 0, 0)),
            _full_spec((V, M)),
            _full_spec((T, M)),
            _full_spec((K * M, H)), _full_spec((1, H)), _full_spec((1, H)), _full_spec((1, H)),
            _full_spec((K * H, H)), _full_spec((1, H)), _full_spec((1, H)), _full_spec((1, H)),
            _full_spec((1, H)),
            pl.BlockSpec(memory_space=pltpu.MemorySpace.SMEM),       # proj bias scalar
        ],
        out_specs=(pl.BlockSpec((1, T, M), lambda b: (b, 0, 0)),
                   pl.BlockSpec((1, 1, T), lambda b: (b, 0, 0))),
        compiler_params=pltpu.CompilerParams(
            dimension_semantics=("parallel",),
            vmem_limit_bytes=48 * 1024 * 1024),
    )(enc_bf16, idx1, vrow1, char_ids,
      embw_scaled, freqs_char, w1s, b1, g1, be1, w2s, b2, g2, be2, pw, pb)


def unit_upsampling(seqs_char, lo_blk, hi_blk, idx_rel, freqs_unit, *, tt):
    N, Tc, M = seqs_char.shape
    Tu = idx_rel.shape[1]
    n_tiles = Tu // tt
    grid_spec = pltpu.PrefetchScalarGridSpec(
        num_scalar_prefetch=2,
        grid=(N, n_tiles),
        in_specs=[
            pl.BlockSpec((1, tt, 1), lambda b, j, lo, hi: (b, j, 0)),
            # data-dependent source windows: two 128-row blocks of seqs_char,
            # block indices come from the scalar-prefetched per-tile tables.
            pl.BlockSpec((1, tt, M), lambda b, j, lo, hi: (b, lo[b * n_tiles + j], 0)),
            pl.BlockSpec((1, tt, M), lambda b, j, lo, hi: (b, hi[b * n_tiles + j], 0)),
            pl.BlockSpec((tt, M), lambda b, j, lo, hi: (j, 0)),
        ],
        out_specs=pl.BlockSpec((1, tt, M), lambda b, j, lo, hi: (b, j, 0)),
    )
    return pl.pallas_call(
        _unit_upsample_kernel,
        out_shape=jax.ShapeDtypeStruct((N, Tu, M), jnp.bfloat16),
        grid_spec=grid_spec,
        compiler_params=pltpu.CompilerParams(
            dimension_semantics=("parallel", "parallel"),
            vmem_limit_bytes=48 * 1024 * 1024),
    )(lo_blk, hi_blk, idx_rel, seqs_char, seqs_char, freqs_unit)


# ----------------------------- host-side glue ---------------------------------

def _round_up(x, m):
    return ((x + m - 1) // m) * m


def synth_text_to_char(text_seqs_np, v_char):
    # Stand-in for the tokenizer string processing (TagManager.preprocess_text_seqs,
    # indices_to_subwords, count_character_length_in_subword, get_char_seqs).
    # TODO(synk): real SentencePiece/char tokenizers are host string ops with no
    # Pallas equivalent; a deterministic synthetic mapping is used instead.
    N, S = text_seqs_np.shape
    proc = text_seqs_np[:, 2:].copy()                  # preprocess_text_seqs
    proc[proc == EOS_IDX] = PAD_IDX
    core_lens = np.zeros_like(proc)
    char_id_lists = [[] for _ in range(N)]
    for b in range(N):
        for i in range(proc.shape[1]):
            tok = int(proc[b, i])
            if tok == PAD_IDX:
                break
            if tok == UNK_IDX:
                length, ids = 1, [UNK_IDX]
            else:
                length = (tok % 4) + 1
                ids = [3 + ((tok * 7 + j) % (v_char - 3)) for j in range(length)]
            core_lens[b, i] = length
            char_id_lists[b].extend(ids)
    char_lens = np.zeros((N, S), dtype=np.int64)       # postprocess_dur_or_len pads
    char_lens[:, 1:S - 1] = core_lens                  # a zero column on each side
    char_seq_lens = char_lens.sum(1)
    t_char = _round_up(int(char_seq_lens.max()), 128)  # lane-align the char axis
    char_seqs = np.full((N, t_char), PAD_IDX, dtype=np.int32)
    for b in range(N):
        ids = char_id_lists[b]
        char_seqs[b, :len(ids)] = ids
    return char_seqs, char_seq_lens, char_lens


def build_upsample_index(lens_np, t_total):
    # HardUpsampling gather index; -1 marks padded output rows (so the in-kernel
    # one-hot row is all zero -- no separate validity multiply / f32 temp).
    N, S = lens_np.shape
    idx = np.full((N, t_total), -1, dtype=np.int32)
    for b in range(N):
        rep = np.repeat(np.arange(S, dtype=np.int32), lens_np[b])
        idx[b, :len(rep)] = rep
    return idx


def build_tiled_unit_index(dur_np, tt, tc):
    # Per-tile source window blocks for the tiled unit-upsampling kernel.
    # idx is monotone and min_duration>=1, so the source span of any tt-row
    # output tile is <= tt rows and always fits in two consecutive tt-row blocks.
    N = dur_np.shape[0]
    seq_lens = dur_np.sum(1).astype(np.int64)
    tu = _round_up(max(int(seq_lens.max()), 1), tt)
    n_tiles = tu // tt
    nblk = tc // tt
    idx = np.full((N, tu), -1, dtype=np.int32)
    for b in range(N):
        rep = np.repeat(np.arange(dur_np.shape[1], dtype=np.int32), dur_np[b])
        idx[b, :len(rep)] = rep
    lo_blk = np.zeros((N, n_tiles), np.int32)
    hi_blk = np.zeros((N, n_tiles), np.int32)
    idx_rel = np.full((N, tu), -1, np.int32)
    for b in range(N):
        for j in range(n_tiles):
            seg = idx[b, j * tt:(j + 1) * tt]
            valid = seg >= 0
            k = int(seg[valid].min()) // tt if valid.any() else 0
            lo_blk[b, j] = k
            hi_blk[b, j] = min(k + 1, nblk - 1)
            idx_rel[b, j * tt:(j + 1) * tt] = np.where(valid, seg - k * tt, -1)
    assert idx_rel.max() < 2 * tt                      # window coverage invariant
    return idx, idx_rel, lo_blk, hi_blk, seq_lens, tu, n_tiles


def sinusoidal_table(T, M):
    # Interleaved sin/cos (stands in for SinusoidalPositionEncoder;
    # pos_enc(seqs) - seqs reduces to this content-independent table).
    pos = np.arange(T, dtype=np.float64)[:, None]
    i = np.arange(M // 2, dtype=np.float64)[None, :]
    ang = pos / np.power(10000.0, 2.0 * i / M)
    pe = np.zeros((T, M), dtype=np.float32)
    pe[:, 0::2] = np.sin(ang)
    pe[:, 1::2] = np.cos(ang)
    return pe


# ----------------------------- NumPy reference --------------------------------

def _ref_conv_block(x, valid_col, w, b, g, be):
    T, K = x.shape[0], w.shape[0]
    pad = (K - 1) // 2
    xm = x * valid_col
    out = np.zeros((T, w.shape[2]), np.float32)
    for k in range(K):
        off = k - pad
        sh = np.zeros_like(xm)
        lo, hi = max(0, -off), min(T, T - off)
        sh[lo:hi] = xm[lo + off:hi + off]
        out += sh @ w[k]
    out += b
    out = np.maximum(out, 0.0)
    mu = out.mean(-1, keepdims=True)
    var = out.var(-1, keepdims=True)
    return (out - mu) / np.sqrt(var + LN_EPS) * g + be


def _ref_frontend(enc, char_seqs, char_lens, char_seq_lens, freqs_char, emb_scaled,
                  c1w, c1b, g1, be1, c2w, c2b, g2, be2, pw, pb,
                  duration_factor, min_duration):
    N, S, M = enc.shape
    T = char_seqs.shape[1]
    sc = np.zeros((N, T, M), np.float32)
    dur = np.zeros((N, T), np.int64)
    for b in range(N):
        rep = np.repeat(np.arange(S), char_lens[b])
        up = np.zeros((T, M), np.float32)
        up[:len(rep)] = enc[b, rep]
        sc[b] = up + freqs_char + emb_scaled[char_seqs[b]]
        valid = (np.arange(T) < char_seq_lens[b]).astype(np.float32)[:, None]
        h1 = _ref_conv_block(sc[b], valid, c1w, c1b, g1, be1)
        h2 = _ref_conv_block(h1, valid, c2w, c2b, g2, be2)
        h2 = h2 * valid
        logd = h2 @ pw[0] + pb[0]
        d = np.maximum(np.round((np.exp(logd) - 1.0) * duration_factor),
                       float(min_duration))
        dur[b] = (d * valid[:, 0]).astype(np.int64)
    return sc, dur


# ----------------------------- main --------------------------------------------

if __name__ == "__main__":
    # TPU-native small shapes: M = H = 128 (tile aligned); S chosen so the char
    # axis spans two 128-row source blocks and MXU operands get 256 rows.
    N, S, M = 2, 64, 128
    V_TEXT, V_CHAR, H, K = 32, 128, 128, 3
    TT = 128                                 # time tile / source window block
    DURATION_FACTOR, MIN_DURATION = 1.0, 1

    key = jax.random.PRNGKey(0)
    (k_enc, k_txt, k_emb, k_w1, k_b1, k_w2, k_b2, k_pw, k_pb,
     k_g1, k_be1, k_g2, k_be2) = jax.random.split(key, 13)

    encoder_output = jax.random.normal(k_enc, (N, S, M), jnp.float32)
    text_seqs = np.array(jax.random.randint(k_txt, (N, S), 3, V_TEXT), dtype=np.int32)
    text_seqs[1, -1] = EOS_IDX               # exercise the eos->pad masking path
    text_seqs[0, 5] = UNK_IDX                # exercise the unk->single-char path

    # 0. probe pltpu.roll direction (guards the +1/-1 conv-tap assignment)
    roll_shift_sign = detect_roll_shift_sign()

    # 1. text -> char seqs (host, tokenizer-equivalent)
    char_seqs, char_seq_lens, char_lens = synth_text_to_char(text_seqs, V_CHAR)
    T_char = char_seqs.shape[1]
    idx1 = build_upsample_index(char_lens, T_char)           # (N, T_char), -1 = pad
    vrow1 = (idx1 >= 0).astype(np.float32)[:, None, :]       # (N, 1, T_char)

    # host-side constant folding: scale=sqrt(M) into the char embedding (PAD row
    # zeroed), pos_emb_alpha_char / pos_emb_alpha into the sinusoidal tables.
    scale = math.sqrt(M)
    alpha_char, alpha_unit = 1.0, 1.0

    emb_char_w = 0.02 * np.asarray(jax.random.normal(k_emb, (V_CHAR, M), jnp.float32))
    emb_char_w[PAD_IDX] = 0.0
    emb_scaled_np = (scale * emb_char_w).astype(np.float32)
    emb_char_scaled = jnp.asarray(emb_scaled_np).astype(jnp.bfloat16)

    conv1_w = 0.02 * np.asarray(jax.random.normal(k_w1, (K, M, H), jnp.float32))
    conv1_b = 0.02 * np.asarray(jax.random.normal(k_b1, (1, H), jnp.float32))
    conv2_w = 0.02 * np.asarray(jax.random.normal(k_w2, (K, H, H), jnp.float32))
    conv2_b = 0.02 * np.asarray(jax.random.normal(k_b2, (1, H), jnp.float32))
    ln1_g = 1.0 + 0.1 * np.asarray(jax.random.normal(k_g1, (1, H), jnp.float32))
    ln1_b = 0.1 * np.asarray(jax.random.normal(k_be1, (1, H), jnp.float32))
    ln2_g = 1.0 + 0.1 * np.asarray(jax.random.normal(k_g2, (1, H), jnp.float32))
    ln2_b = 0.1 * np.asarray(jax.random.normal(k_be2, (1, H), jnp.float32))
    proj_w = 0.02 * np.asarray(jax.random.normal(k_pw, (1, H), jnp.float32))
    # bias offset so predicted durations are > 1 and the unit axis spans several
    # 128-row tiles (exercises the tiled / windowed unit-upsampling path).
    proj_b = 1.5 + 0.02 * np.asarray(jax.random.normal(k_pb, (1,), jnp.float32))

    freqs_char_np = alpha_char * sinusoidal_table(T_char, M)
    freqs_char = jnp.asarray(freqs_char_np)

    # 2.+3. fused char upsampling + duration predictor (Pallas kernel A)
    seqs_char, durations = char_upsample_and_duration(
        encoder_output.astype(jnp.bfloat16),
        jnp.asarray(idx1[..., None]),
        jnp.asarray(vrow1),
        jnp.asarray(char_seqs[..., None].astype(np.int32)),
        emb_char_scaled, freqs_char,
        jnp.asarray(conv1_w.reshape(K * M, H)).astype(jnp.bfloat16),
        jnp.asarray(conv1_b), jnp.asarray(ln1_g), jnp.asarray(ln1_b),
        jnp.asarray(conv2_w.reshape(K * H, H)).astype(jnp.bfloat16),
        jnp.asarray(conv2_b), jnp.asarray(ln2_g), jnp.asarray(ln2_b),
        jnp.asarray(proj_w), jnp.asarray(proj_b),
        K=K, duration_factor=DURATION_FACTOR, min_duration=MIN_DURATION,
        roll_shift_sign=roll_shift_sign)
    jax.block_until_ready(seqs_char)
    dur_k = np.asarray(durations)[:, 0, :].astype(np.int64)    # (N, T_char)

    # 4. length regulator + unit pos embedding (Pallas kernel B); output length
    #    is data dependent -> resolved on host, exactly like PyTorch's dynamic max.
    idx2, idx_rel, lo_blk, hi_blk, seq_lens, T_unit, n_tiles = \
        build_tiled_unit_index(dur_k, TT, T_char)
    freqs_unit_np = alpha_unit * sinusoidal_table(T_unit, M)
    out = unit_upsampling(
        seqs_char,
        jnp.asarray(lo_blk.reshape(-1)), jnp.asarray(hi_blk.reshape(-1)),
        jnp.asarray(idx_rel[..., None]),
        jnp.asarray(freqs_unit_np).astype(jnp.bfloat16),
        tt=TT)
    out = jax.block_until_ready(out)

    # ---- correctness check against a pure NumPy reference of the forward ----
    sc_ref, dur_ref = _ref_frontend(
        np.asarray(encoder_output), char_seqs, char_lens, char_seq_lens,
        freqs_char_np, emb_scaled_np,
        conv1_w, conv1_b, ln1_g, ln1_b, conv2_w, conv2_b, ln2_g, ln2_b,
        proj_w, proj_b, DURATION_FACTOR, MIN_DURATION)
    sc_k = np.asarray(seqs_char).astype(np.float32)
    out_k = np.asarray(out).astype(np.float32)
    out_ref = np.zeros((N, T_unit, M), np.float32)
    for b in range(N):
        rep = np.repeat(np.arange(T_char), dur_k[b])
        out_ref[b, :len(rep)] = sc_k[b, rep]
        out_ref[b] += freqs_unit_np

    assert seqs_char.shape == (N, T_char, M) and durations.shape == (N, 1, T_char)
    assert out.shape == (N, T_unit, M)
    assert np.allclose(sc_k, sc_ref, rtol=2e-2, atol=1e-1)
    valid_mask = np.arange(T_char)[None, :] < char_seq_lens[:, None]
    assert np.all(np.abs(dur_k - dur_ref) <= 1)          # bf16-vs-f32 rounding slack
    assert np.all(dur_k[~valid_mask] == 0)
    assert np.all(dur_k[valid_mask] >= MIN_DURATION)
    assert np.allclose(out_k, out_ref, rtol=3e-2, atol=1e-1)
    assert np.all(np.isfinite(out_k))
    print("KERNEL_OK")
</pallas_src>

<mosaic_0001>
module attributes {stable_mosaic.version = 11 : i64} {
  func.func @_roll_probe_kernel(%arg0: memref<8x128xf32, #tpu.memory_space<vmem>>, %arg1: memref<8x128xf32, #tpu.memory_space<vmem>>) attributes {dimension_semantics = [], scalar_prefetch = 0 : i64, scratch_operands = 0 : i64, tpu.core_type = #tpu.core_type<tc>} {
    %c0 = arith.constant 0 : index
    %c0_0 = arith.constant 0 : index
    %0 = vector.load %arg0[%c0, %c0_0] : memref<8x128xf32, #tpu.memory_space<vmem>>, vector<8x128xf32>
    %c1_i32 = arith.constant 1 : i32
    %1 = tpu.dynamic_rotate %0 by %c1_i32 dim 0 : vector<8x128xf32>, i32 -> vector<8x128xf32>
    %c0_1 = arith.constant 0 : index
    %c0_2 = arith.constant 0 : index
    %2 = vector.load %arg1[%c0_1, %c0_2] : memref<8x128xf32, #tpu.memory_space<vmem>>, vector<8x128xf32>
    tpu.vector_store %arg1[%c0_1, %c0_2], %1 {strides = array<i32>} : memref<8x128xf32, #tpu.memory_space<vmem>>, vector<8x128xf32>,
    return
  }
}

</mosaic_0001>

<bundles_post_ra>
// kernel: tpu_custom_call.1
= control target key start
LH: loop header
LB: loop body
LE: loop exit
PB: predicated region body
PF: predicated region fallthrough
CT: control target
= control target key end

     0   :  { %6 = vsyncpa [#allocation3], 0  ;;  %s125_s0 = inlined_call_operand.hbm [shape: f32[8,128], index: 0, kind: input, shape index: {}]   ;;  %s126_s1 = inlined_call_operand.hbm [shape: f32[8,128], index: 1, kind: output, shape index: {}]  }
   0x1   :  { %7 = vsyncpa [#allocation4], 0  ;;  %s89_s6 = smov [#allocation2]   ;;  %s41_s10 = scalar_lea.hbm %s125_s0, 128 }
   0x2   :  { %s14_s7 = sshll.u32 %s89_s6, 4  ;;  %p42_p0 = scmp.ne.s32.totalorder %s125_s0, %s41_s10  ;;  %s15_s7 = int_to_ptr.vmem [resolvable:$true] %s14_s7 }
   0x3   :  { %p45_p1 = scmp.lt.u32.totalorder %s41_s10, %s125_s0 }
   0x5   :  { %p47_p2 = pnand %p45_p1, %p42_p0 }
   0x7   :  { %50 = shalt.err (!%p47_p2)
}
   0x8   :  { %s51_s15 = scalar_lea.vmem %s15_s7, 128  ;;  %p56_p4 = scmp.lt.s32.totalorder %s15_s7, %s15_s7 }
   0x9   :  { %p52_p3 = scmp.ne.s32.totalorder %s15_s7, %s51_s15  ;;  %p57_p5 = scmp.lt.s32.totalorder %s51_s15, %s51_s15 }
   0xb   :  { %p58_p6 = por %p57_p5, %p56_p4 }
   0xd   :  { %p59_p7 = pnand %p58_p6, %p52_p3 }
   0xf   :  { %62 = shalt.err (!%p59_p7)
}
  0x10   :  { %17 = dma.hbm_to_vmem [thread:$0]  %s125_s0, 128, %s15_s7, [#allocation3]  }
  0x11   :  { %85 = dma.done.wait [#allocation3], 128  }
  0x12   :  { %86 = vsyncadd [#allocation3], 4294967168  ;;  %s90_s18 = smov [#allocation5]   ;;  %v21_v0 = vld [vmem:[#allocation2] sm:$0xff] }
  0x13   :  { %s30_s19 = sshll.u32 %s90_s18, 4  ;;  %v22_v1 = vrot.slane %v21_v0, 7  ;;  %s31_s19 = int_to_ptr.vmem [resolvable:$true] %s30_s19 }
  0x14   :  { %s63_s20 = scalar_lea.vmem %s31_s19, 128  ;;  %p68_p9 = scmp.lt.s32.totalorder %s31_s19, %s31_s19 }
  0x15   :  { %23 = vst [vmem:[#allocation5] sm:$0xff] %v22_v1  ;;  %p64_p8 = scmp.ne.s32.totalorder %s31_s19, %s63_s20  ;;  %p69_p10 = scmp.lt.s32.totalorder %s63_s20, %s63_s20 }
  0x17   :  { %p70_p11 = por %p69_p10, %p68_p9 }
  0x19   :  { %p71_p12 = pnand %p70_p11, %p64_p8 }
  0x1b   :  { %74 = shalt.err (!%p71_p12)
}
  0x1c   :  { %s75_s23 = scalar_lea.hbm %s126_s1, 128 }
  0x1d   :  { %p76_p13 = scmp.ne.s32.totalorder %s126_s1, %s75_s23  ;;  %p79_p0 = scmp.lt.u32.totalorder %s75_s23, %s126_s1 }
  0x1f   :  { %p81_p1 = pnand %p79_p0, %p76_p13 }
  0x21   :  { %84 = shalt.err (!%p81_p1)
}
  0x22   :  { %33 = dma.vmem_to_hbm [thread:$0]  %s31_s19, 128, %s126_s1, [#allocation4]  }
  0x23   :  { %87 = dma.done.wait [#allocation4], 128  }
  0x24   :  { %88 = vsyncadd [#allocation4], 4294967168 }
  0x25   :  { %37 = vsyncpa [#allocation3], 1 }
  0x26   :  { %38 = vsyncpa [#allocation4], 1 }

</bundles_post_ra>
